<compile_context>
chip_gen: v7x
topology: tpu7x:2x2x1
jax: 0.10.0
libtpu: 0.0.40
codegen_flags: <defaults>
</compile_context>

<pallas_src>
import jax
import jax.numpy as jnp
from jax.experimental import pallas as pl
from jax.experimental.pallas import tpu as pltpu

_UNROLL = 8  # token_tile is always a multiple of 8 (sublane rounding below)


def _gather_kernel(ids_ref, table_hbm, out_ref, sem):
    # ids_ref:   (Np,)  int32 in SMEM (scalar prefetch) -- all token ids
    # table_hbm: (V, D) table, left in HBM (pl.ANY); rows DMA'd on demand
    # out_ref:   (T, D) VMEM output block for this tile
    # sem:       single DMA semaphore shared by the T equal-sized row copies
    tile = pl.program_id(0)
    T = out_ref.shape[0]
    V = table_hbm.shape[0]
    base = tile * T

    # Phase 1: issue one row DMA per token in this tile (HBM row -> out row).
    @pl.loop(0, T // _UNROLL)
    def _issue(j):
        for u in range(_UNROLL):
            i = j * _UNROLL + u
            tok = ids_ref[base + i]
            # TODO(synk): PyTorch raises on out-of-range ids; no in-kernel
            # error mechanism here, so clamp to a valid row instead.
            tok = jnp.minimum(jnp.maximum(tok, 0), V - 1)
            pltpu.make_async_copy(
                table_hbm.at[pl.ds(tok, 1), :],
                out_ref.at[pl.ds(i, 1), :],
                sem,
            ).start()

    # Phase 2: wait for all T copies (equal-sized, shared sem -> T matching
    # waits) before the pipeline writes this output block back to HBM.
    @pl.loop(0, T // _UNROLL)
    def _wait(j):
        for u in range(_UNROLL):
            i = j * _UNROLL + u
            pltpu.make_async_copy(
                table_hbm.at[pl.ds(0, 1), :],
                out_ref.at[pl.ds(i, 1), :],
                sem,
            ).wait()


def embedder_forward(x, table, *, token_tile=512):
    """Equivalent of Embedder.forward: x (B, S) int -> (B, S, D) float."""
    B, S = x.shape
    V, D = table.shape
    N = B * S
    ids = x.reshape(N).astype(jnp.int32)

    # Tile size: multiple of 8 (sublane), no bigger than the (rounded-up) token
    # count so small inputs don't pay for padding or a post-kernel slice.
    round8 = lambda n: ((n + 7) // 8) * 8
    T = max(8, min(token_tile, round8(N)))
    T = round8(T)
    pad = (-N) % T
    if pad:
        ids = jnp.concatenate([ids, jnp.zeros((pad,), jnp.int32)], axis=0)
    Np = N + pad

    out = pl.pallas_call(
        _gather_kernel,
        out_shape=jax.ShapeDtypeStruct((Np, D), table.dtype),
        grid_spec=pltpu.PrefetchScalarGridSpec(
            num_scalar_prefetch=1,          # ids -> SMEM, drive DMA addressing
            grid=(Np // T,),
            in_specs=[
                # full table stays in HBM; rows are fetched manually by DMA
                pl.BlockSpec(memory_space=pl.ANY),
            ],
            out_specs=pl.BlockSpec((T, D), lambda t, ids: (t, 0)),
            scratch_shapes=[pltpu.SemaphoreType.DMA(())],
        ),
        compiler_params=pltpu.CompilerParams(
            dimension_semantics=("parallel",)),
    )(ids, table)

    if pad:
        out = out[:N]
    return out.reshape(B, S, D)


if __name__ == "__main__":
    key = jax.random.PRNGKey(0)
    V, D = 64, 128      # vocab size, embedding dim (text_embedding_vectors: (V, D))
    B, S = 2, 8         # batch, sequence length

    k_tab, k_idx = jax.random.split(key)
    # deterministic "pretrained" embedding table (frozen weights)
    table = jax.random.normal(k_tab, (V, D), dtype=jnp.float32)
    # integer token ids
    x = jax.random.randint(k_idx, (B, S), 0, V, dtype=jnp.int32)

    out = embedder_forward(x, table)
    jax.block_until_ready(out)

    # reference: plain gather (what nn.Embedding does)
    ref = table[x]
    assert out.shape == (B, S, D), out.shape
    assert out.dtype == jnp.float32
    assert jnp.allclose(out, ref), "mismatch vs reference gather"

    # exercise the non-multiple-of-tile (padding) path as well
    x2 = jax.random.randint(jax.random.PRNGKey(1), (3, 5), 0, V, dtype=jnp.int32)
    out2 = embedder_forward(x2, table)
    jax.block_until_ready(out2)
    assert out2.shape == (3, 5, D)
    assert jnp.allclose(out2, table[x2]), "mismatch vs reference gather (padded)"

    print("KERNEL_OK")
</pallas_src>

<mosaic_0001>
module attributes {stable_mosaic.version = 11 : i64} {
  func.func @_gather_kernel(%arg0: i32, %arg1: memref<16xi32, #tpu.memory_space<smem>>, %arg2: memref<64x128xf32, #tpu.memory_space<any>>, %arg3: memref<16x128xf32, #tpu.memory_space<vmem>>, %arg4: memref<!tpu.dma_semaphore, #tpu.memory_space<semaphore_mem>>) attributes {dimension_semantics = [#tpu.dimension_semantics<parallel>], iteration_bounds = array<i64: 1>, scalar_prefetch = 1 : i64, scratch_operands = 1 : i64, tpu.core_type = #tpu.core_type<tc>, window_params = [{}, {transform_indices = @transform_1, window_bounds = array<i64: 16, 128>}]} {
    %c16_i32 = arith.constant 16 : i32
    %0 = arith.muli %arg0, %c16_i32 : i32
    %c0_i32 = arith.constant 0 : i32
    %c2_i32 = arith.constant 2 : i32
    %1 = arith.addi %c0_i32, %c2_i32 : i32
    %c1_i32 = arith.constant 1 : i32
    scf.for %arg5 = %c0_i32 to %1 step %c1_i32  : i32 {
      %c1_i32_5 = arith.constant 1 : i32
      %3 = arith.muli %arg5, %c1_i32_5 : i32
      %c0_i32_6 = arith.constant 0 : i32
      %4 = arith.addi %c0_i32_6, %3 : i32
      %c8_i32 = arith.constant 8 : i32
      %5 = arith.muli %4, %c8_i32 : i32
      %c0_i32_7 = arith.constant 0 : i32
      %6 = arith.addi %5, %c0_i32_7 : i32
      %7 = arith.addi %0, %6 : i32
      %8 = arith.index_cast %7 : i32 to index
      %9 = memref.load %arg1[%8] : memref<16xi32, #tpu.memory_space<smem>>
      %c0_i32_8 = arith.constant 0 : i32
      %10 = arith.maxsi %9, %c0_i32_8 : i32
      %c63_i32 = arith.constant 63 : i32
      %11 = arith.minsi %10, %c63_i32 : i32
      %c0_i32_9 = arith.constant 0 : i32
      %12 = tpu.memref_slice %arg2[%11, %c0_i32_9] : memref<64x128xf32, #tpu.memory_space<any>> -> memref<1x128xf32, #tpu.memory_space<any>>
      %c0_i32_10 = arith.constant 0 : i32
      %13 = tpu.memref_slice %arg3[%6, %c0_i32_10] : memref<16x128xf32, #tpu.memory_space<vmem>> -> memref<1x128xf32, #tpu.memory_space<vmem>>
      tpu.enqueue_dma source(%12 : memref<1x128xf32, #tpu.memory_space<any>>) target(%13 : memref<1x128xf32, #tpu.memory_space<vmem>>) target_semaphore(%arg4 : memref<!tpu.dma_semaphore, #tpu.memory_space<semaphore_mem>>)
      %c8_i32_11 = arith.constant 8 : i32
      %14 = arith.muli %4, %c8_i32_11 : i32
      %c1_i32_12 = arith.constant 1 : i32
      %15 = arith.addi %14, %c1_i32_12 : i32
      %16 = arith.addi %0, %15 : i32
      %17 = arith.index_cast %16 : i32 to index
      %18 = memref.load %arg1[%17] : memref<16xi32, #tpu.memory_space<smem>>
      %c0_i32_13 = arith.constant 0 : i32
      %19 = arith.maxsi %18, %c0_i32_13 : i32
      %c63_i32_14 = arith.constant 63 : i32
      %20 = arith.minsi %19, %c63_i32_14 : i32
      %c0_i32_15 = arith.constant 0 : i32
      %21 = tpu.memref_slice %arg2[%20, %c0_i32_15] : memref<64x128xf32, #tpu.memory_space<any>> -> memref<1x128xf32, #tpu.memory_space<any>>
      %c0_i32_16 = arith.constant 0 : i32
      %22 = tpu.memref_slice %arg3[%15, %c0_i32_16] : memref<16x128xf32, #tpu.memory_space<vmem>> -> memref<1x128xf32, #tpu.memory_space<vmem>>
      tpu.enqueue_dma source(%21 : memref<1x128xf32, #tpu.memory_space<any>>) target(%22 : memref<1x128xf32, #tpu.memory_space<vmem>>) target_semaphore(%arg4 : memref<!tpu.dma_semaphore, #tpu.memory_space<semaphore_mem>>)
      %c8_i32_17 = arith.constant 8 : i32
      %23 = arith.muli %4, %c8_i32_17 : i32
      %c2_i32_18 = arith.constant 2 : i32
      %24 = arith.addi %23, %c2_i32_18 : i32
      %25 = arith.addi %0, %24 : i32
      %26 = arith.index_cast %25 : i32 to index
      %27 = memref.load %arg1[%26] : memref<16xi32, #tpu.memory_space<smem>>
      %c0_i32_19 = arith.constant 0 : i32
      %28 = arith.maxsi %27, %c0_i32_19 : i32
      %c63_i32_20 = arith.constant 63 : i32
      %29 = arith.minsi %28, %c63_i32_20 : i32
      %c0_i32_21 = arith.constant 0 : i32
      %30 = tpu.memref_slice %arg2[%29, %c0_i32_21] : memref<64x128xf32, #tpu.memory_space<any>> -> memref<1x128xf32, #tpu.memory_space<any>>
      %c0_i32_22 = arith.constant 0 : i32
      %31 = tpu.memref_slice %arg3[%24, %c0_i32_22] : memref<16x128xf32, #tpu.memory_space<vmem>> -> memref<1x128xf32, #tpu.memory_space<vmem>>
      tpu.enqueue_dma source(%30 : memref<1x128xf32, #tpu.memory_space<any>>) target(%31 : memref<1x128xf32, #tpu.memory_space<vmem>>) target_semaphore(%arg4 : memref<!tpu.dma_semaphore, #tpu.memory_space<semaphore_mem>>)
      %c8_i32_23 = arith.constant 8 : i32
      %32 = arith.muli %4, %c8_i32_23 : i32
      %c3_i32 = arith.constant 3 : i32
      %33 = arith.addi %32, %c3_i32 : i32
      %34 = arith.addi %0, %33 : i32
      %35 = arith.index_cast %34 : i32 to index
      %36 = memref.load %arg1[%35] : memref<16xi32, #tpu.memory_space<smem>>
      %c0_i32_24 = arith.constant 0 : i32
      %37 = arith.maxsi %36, %c0_i32_24 : i32
      %c63_i32_25 = arith.constant 63 : i32
      %38 = arith.minsi %37, %c63_i32_25 : i32
      %c0_i32_26 = arith.constant 0 : i32
      %39 = tpu.memref_slice %arg2[%38, %c0_i32_26] : memref<64x128xf32, #tpu.memory_space<any>> -> memref<1x128xf32, #tpu.memory_space<any>>
      %c0_i32_27 = arith.constant 0 : i32
      %40 = tpu.memref_slice %arg3[%33, %c0_i32_27] : memref<16x128xf32, #tpu.memory_space<vmem>> -> memref<1x128xf32, #tpu.memory_space<vmem>>
      tpu.enqueue_dma source(%39 : memref<1x128xf32, #tpu.memory_space<any>>) target(%40 : memref<1x128xf32, #tpu.memory_space<vmem>>) target_semaphore(%arg4 : memref<!tpu.dma_semaphore, #tpu.memory_space<semaphore_mem>>)
      %c8_i32_28 = arith.constant 8 : i32
      %41 = arith.muli %4, %c8_i32_28 : i32
      %c4_i32 = arith.constant 4 : i32
      %42 = arith.addi %41, %c4_i32 : i32
      %43 = arith.addi %0, %42 : i32
      %44 = arith.index_cast %43 : i32 to index
      %45 = memref.load %arg1[%44] : memref<16xi32, #tpu.memory_space<smem>>
      %c0_i32_29 = arith.constant 0 : i32
      %46 = arith.maxsi %45, %c0_i32_29 : i32
      %c63_i32_30 = arith.constant 63 : i32
      %47 = arith.minsi %46, %c63_i32_30 : i32
      %c0_i32_31 = arith.constant 0 : i32
      %48 = tpu.memref_slice %arg2[%47, %c0_i32_31] : memref<64x128xf32, #tpu.memory_space<any>> -> memref<1x128xf32, #tpu.memory_space<any>>
      %c0_i32_32 = arith.constant 0 : i32
      %49 = tpu.memref_slice %arg3[%42, %c0_i32_32] : memref<16x128xf32, #tpu.memory_space<vmem>> -> memref<1x128xf32, #tpu.memory_space<vmem>>
      tpu.enqueue_dma source(%48 : memref<1x128xf32, #tpu.memory_space<any>>) target(%49 : memref<1x128xf32, #tpu.memory_space<vmem>>) target_semaphore(%arg4 : memref<!tpu.dma_semaphore, #tpu.memory_space<semaphore_mem>>)
      %c8_i32_33 = arith.constant 8 : i32
      %50 = arith.muli %4, %c8_i32_33 : i32
      %c5_i32 = arith.constant 5 : i32
      %51 = arith.addi %50, %c5_i32 : i32
      %52 = arith.addi %0, %51 : i32
      %53 = arith.index_cast %52 : i32 to index
      %54 = memref.load %arg1[%53] : memref<16xi32, #tpu.memory_space<smem>>
      %c0_i32_34 = arith.constant 0 : i32
      %55 = arith.maxsi %54, %c0_i32_34 : i32
      %c63_i32_35 = arith.constant 63 : i32
      %56 = arith.minsi %55, %c63_i32_35 : i32
      %c0_i32_36 = arith.constant 0 : i32
      %57 = tpu.memref_slice %arg2[%56, %c0_i32_36] : memref<64x128xf32, #tpu.memory_space<any>> -> memref<1x128xf32, #tpu.memory_space<any>>
      %c0_i32_37 = arith.constant 0 : i32
      %58 = tpu.memref_slice %arg3[%51, %c0_i32_37] : memref<16x128xf32, #tpu.memory_space<vmem>> -> memref<1x128xf32, #tpu.memory_space<vmem>>
      tpu.enqueue_dma source(%57 : memref<1x128xf32, #tpu.memory_space<any>>) target(%58 : memref<1x128xf32, #tpu.memory_space<vmem>>) target_semaphore(%arg4 : memref<!tpu.dma_semaphore, #tpu.memory_space<semaphore_mem>>)
      %c8_i32_38 = arith.constant 8 : i32
      %59 = arith.muli %4, %c8_i32_38 : i32
      %c6_i32 = arith.constant 6 : i32
      %60 = arith.addi %59, %c6_i32 : i32
      %61 = arith.addi %0, %60 : i32
      %62 = arith.index_cast %61 : i32 to index
      %63 = memref.load %arg1[%62] : memref<16xi32, #tpu.memory_space<smem>>
      %c0_i32_39 = arith.constant 0 : i32
      %64 = arith.maxsi %63, %c0_i32_39 : i32
      %c63_i32_40 = arith.constant 63 : i32
      %65 = arith.minsi %64, %c63_i32_40 : i32
      %c0_i32_41 = arith.constant 0 : i32
      %66 = tpu.memref_slice %arg2[%65, %c0_i32_41] : memref<64x128xf32, #tpu.memory_space<any>> -> memref<1x128xf32, #tpu.memory_space<any>>
      %c0_i32_42 = arith.constant 0 : i32
      %67 = tpu.memref_slice %arg3[%60, %c0_i32_42] : memref<16x128xf32, #tpu.memory_space<vmem>> -> memref<1x128xf32, #tpu.memory_space<vmem>>
      tpu.enqueue_dma source(%66 : memref<1x128xf32, #tpu.memory_space<any>>) target(%67 : memref<1x128xf32, #tpu.memory_space<vmem>>) target_semaphore(%arg4 : memref<!tpu.dma_semaphore, #tpu.memory_space<semaphore_mem>>)
      %c8_i32_43 = arith.constant 8 : i32
      %68 = arith.muli %4, %c8_i32_43 : i32
      %c7_i32 = arith.constant 7 : i32
      %69 = arith.addi %68, %c7_i32 : i32
      %70 = arith.addi %0, %69 : i32
      %71 = arith.index_cast %70 : i32 to index
      %72 = memref.load %arg1[%71] : memref<16xi32, #tpu.memory_space<smem>>
      %c0_i32_44 = arith.constant 0 : i32
      %73 = arith.maxsi %72, %c0_i32_44 : i32
      %c63_i32_45 = arith.constant 63 : i32
      %74 = arith.minsi %73, %c63_i32_45 : i32
      %c0_i32_46 = arith.constant 0 : i32
      %75 = tpu.memref_slice %arg2[%74, %c0_i32_46] : memref<64x128xf32, #tpu.memory_space<any>> -> memref<1x128xf32, #tpu.memory_space<any>>
      %c0_i32_47 = arith.constant 0 : i32
      %76 = tpu.memref_slice %arg3[%69, %c0_i32_47] : memref<16x128xf32, #tpu.memory_space<vmem>> -> memref<1x128xf32, #tpu.memory_space<vmem>>
      tpu.enqueue_dma source(%75 : memref<1x128xf32, #tpu.memory_space<any>>) target(%76 : memref<1x128xf32, #tpu.memory_space<vmem>>) target_semaphore(%arg4 : memref<!tpu.dma_semaphore, #tpu.memory_space<semaphore_mem>>)
    }
    %c2_i32_0 = arith.constant 2 : i32
    %c0_i32_1 = arith.constant 0 : i32
    %c2_i32_2 = arith.constant 2 : i32
    %2 = arith.addi %c0_i32_1, %c2_i32_2 : i32
    %c1_i32_3 = arith.constant 1 : i32
    scf.for %arg5 = %c0_i32_1 to %2 step %c1_i32_3  : i32 {
      %c1_i32_5 = arith.constant 1 : i32
      %3 = arith.muli %arg5, %c1_i32_5 : i32
      %c0_i32_6 = arith.constant 0 : i32
      %4 = arith.addi %c0_i32_6, %3 : i32
      %c8_i32 = arith.constant 8 : i32
      %5 = arith.muli %4, %c8_i32 : i32
      %c0_i32_7 = arith.constant 0 : i32
      %6 = arith.addi %5, %c0_i32_7 : i32
      %c0_i32_8 = arith.constant 0 : i32
      %c0_i32_9 = arith.constant 0 : i32
      %7 = tpu.memref_slice %arg2[%c0_i32_8, %c0_i32_9] : memref<64x128xf32, #tpu.memory_space<any>> -> memref<1x128xf32, #tpu.memory_space<any>>
      %c0_i32_10 = arith.constant 0 : i32
      %8 = tpu.memref_slice %arg3[%6, %c0_i32_10] : memref<16x128xf32, #tpu.memory_space<vmem>> -> memref<1x128xf32, #tpu.memory_space<vmem>>
      tpu.wait_dma2 semaphore(%arg4 : memref<!tpu.dma_semaphore, #tpu.memory_space<semaphore_mem>>) src(%7 : memref<1x128xf32, #tpu.memory_space<any>>) dst(%8 : memref<1x128xf32, #tpu.memory_space<vmem>>)
      %c8_i32_11 = arith.constant 8 : i32
      %9 = arith.muli %4, %c8_i32_11 : i32
      %c1_i32_12 = arith.constant 1 : i32
      %10 = arith.addi %9, %c1_i32_12 : i32
      %c0_i32_13 = arith.constant 0 : i32
      %c0_i32_14 = arith.constant 0 : i32
      %11 = tpu.memref_slice %arg2[%c0_i32_13, %c0_i32_14] : memref<64x128xf32, #tpu.memory_space<any>> -> memref<1x128xf32, #tpu.memory_space<any>>
      %c0_i32_15 = arith.constant 0 : i32
      %12 = tpu.memref_slice %arg3[%10, %c0_i32_15] : memref<16x128xf32, #tpu.memory_space<vmem>> -> memref<1x128xf32, #tpu.memory_space<vmem>>
      tpu.wait_dma2 semaphore(%arg4 : memref<!tpu.dma_semaphore, #tpu.memory_space<semaphore_mem>>) src(%11 : memref<1x128xf32, #tpu.memory_space<any>>) dst(%12 : memref<1x128xf32, #tpu.memory_space<vmem>>)
      %c8_i32_16 = arith.constant 8 : i32
      %13 = arith.muli %4, %c8_i32_16 : i32
      %c2_i32_17 = arith.constant 2 : i32
      %14 = arith.addi %13, %c2_i32_17 : i32
      %c0_i32_18 = arith.constant 0 : i32
      %c0_i32_19 = arith.constant 0 : i32
      %15 = tpu.memref_slice %arg2[%c0_i32_18, %c0_i32_19] : memref<64x128xf32, #tpu.memory_space<any>> -> memref<1x128xf32, #tpu.memory_space<any>>
      %c0_i32_20 = arith.constant 0 : i32
      %16 = tpu.memref_slice %arg3[%14, %c0_i32_20] : memref<16x128xf32, #tpu.memory_space<vmem>> -> memref<1x128xf32, #tpu.memory_space<vmem>>
      tpu.wait_dma2 semaphore(%arg4 : memref<!tpu.dma_semaphore, #tpu.memory_space<semaphore_mem>>) src(%15 : memref<1x128xf32, #tpu.memory_space<any>>) dst(%16 : memref<1x128xf32, #tpu.memory_space<vmem>>)
      %c8_i32_21 = arith.constant 8 : i32
      %17 = arith.muli %4, %c8_i32_21 : i32
      %c3_i32 = arith.constant 3 : i32
      %18 = arith.addi %17, %c3_i32 : i32
      %c0_i32_22 = arith.constant 0 : i32
      %c0_i32_23 = arith.constant 0 : i32
      %19 = tpu.memref_slice %arg2[%c0_i32_22, %c0_i32_23] : memref<64x128xf32, #tpu.memory_space<any>> -> memref<1x128xf32, #tpu.memory_space<any>>
      %c0_i32_24 = arith.constant 0 : i32
      %20 = tpu.memref_slice %arg3[%18, %c0_i32_24] : memref<16x128xf32, #tpu.memory_space<vmem>> -> memref<1x128xf32, #tpu.memory_space<vmem>>
      tpu.wait_dma2 semaphore(%arg4 : memref<!tpu.dma_semaphore, #tpu.memory_space<semaphore_mem>>) src(%19 : memref<1x128xf32, #tpu.memory_space<any>>) dst(%20 : memref<1x128xf32, #tpu.memory_space<vmem>>)
      %c8_i32_25 = arith.constant 8 : i32
      %21 = arith.muli %4, %c8_i32_25 : i32
      %c4_i32 = arith.constant 4 : i32
      %22 = arith.addi %21, %c4_i32 : i32
      %c0_i32_26 = arith.constant 0 : i32
      %c0_i32_27 = arith.constant 0 : i32
      %23 = tpu.memref_slice %arg2[%c0_i32_26, %c0_i32_27] : memref<64x128xf32, #tpu.memory_space<any>> -> memref<1x128xf32, #tpu.memory_space<any>>
      %c0_i32_28 = arith.constant 0 : i32
      %24 = tpu.memref_slice %arg3[%22, %c0_i32_28] : memref<16x128xf32, #tpu.memory_space<vmem>> -> memref<1x128xf32, #tpu.memory_space<vmem>>
      tpu.wait_dma2 semaphore(%arg4 : memref<!tpu.dma_semaphore, #tpu.memory_space<semaphore_mem>>) src(%23 : memref<1x128xf32, #tpu.memory_space<any>>) dst(%24 : memref<1x128xf32, #tpu.memory_space<vmem>>)
      %c8_i32_29 = arith.constant 8 : i32
      %25 = arith.muli %4, %c8_i32_29 : i32
      %c5_i32 = arith.constant 5 : i32
      %26 = arith.addi %25, %c5_i32 : i32
      %c0_i32_30 = arith.constant 0 : i32
      %c0_i32_31 = arith.constant 0 : i32
      %27 = tpu.memref_slice %arg2[%c0_i32_30, %c0_i32_31] : memref<64x128xf32, #tpu.memory_space<any>> -> memref<1x128xf32, #tpu.memory_space<any>>
      %c0_i32_32 = arith.constant 0 : i32
      %28 = tpu.memref_slice %arg3[%26, %c0_i32_32] : memref<16x128xf32, #tpu.memory_space<vmem>> -> memref<1x128xf32, #tpu.memory_space<vmem>>
      tpu.wait_dma2 semaphore(%arg4 : memref<!tpu.dma_semaphore, #tpu.memory_space<semaphore_mem>>) src(%27 : memref<1x128xf32, #tpu.memory_space<any>>) dst(%28 : memref<1x128xf32, #tpu.memory_space<vmem>>)
      %c8_i32_33 = arith.constant 8 : i32
      %29 = arith.muli %4, %c8_i32_33 : i32
      %c6_i32 = arith.constant 6 : i32
      %30 = arith.addi %29, %c6_i32 : i32
      %c0_i32_34 = arith.constant 0 : i32
      %c0_i32_35 = arith.constant 0 : i32
      %31 = tpu.memref_slice %arg2[%c0_i32_34, %c0_i32_35] : memref<64x128xf32, #tpu.memory_space<any>> -> memref<1x128xf32, #tpu.memory_space<any>>
      %c0_i32_36 = arith.constant 0 : i32
      %32 = tpu.memref_slice %arg3[%30, %c0_i32_36] : memref<16x128xf32, #tpu.memory_space<vmem>> -> memref<1x128xf32, #tpu.memory_space<vmem>>
      tpu.wait_dma2 semaphore(%arg4 : memref<!tpu.dma_semaphore, #tpu.memory_space<semaphore_mem>>) src(%31 : memref<1x128xf32, #tpu.memory_space<any>>) dst(%32 : memref<1x128xf32, #tpu.memory_space<vmem>>)
      %c8_i32_37 = arith.constant 8 : i32
      %33 = arith.muli %4, %c8_i32_37 : i32
      %c7_i32 = arith.constant 7 : i32
      %34 = arith.addi %33, %c7_i32 : i32
      %c0_i32_38 = arith.constant 0 : i32
      %c0_i32_39 = arith.constant 0 : i32
      %35 = tpu.memref_slice %arg2[%c0_i32_38, %c0_i32_39] : memref<64x128xf32, #tpu.memory_space<any>> -> memref<1x128xf32, #tpu.memory_space<any>>
      %c0_i32_40 = arith.constant 0 : i32
      %36 = tpu.memref_slice %arg3[%34, %c0_i32_40] : memref<16x128xf32, #tpu.memory_space<vmem>> -> memref<1x128xf32, #tpu.memory_space<vmem>>
      tpu.wait_dma2 semaphore(%arg4 : memref<!tpu.dma_semaphore, #tpu.memory_space<semaphore_mem>>) src(%35 : memref<1x128xf32, #tpu.memory_space<any>>) dst(%36 : memref<1x128xf32, #tpu.memory_space<vmem>>)
    }
    %c2_i32_4 = arith.constant 2 : i32
    return
  }
  func.func @transform_1(%arg0: i32, %arg1: memref<16xi32, #tpu.memory_space<smem>>) -> (i32, i32) {
    %c0_i32 = arith.constant 0 : i32
    %c0_i32_0 = arith.constant 0 : i32
    return %arg0, %c0_i32 : i32, i32
  }
}

</mosaic_0001>

<bundles_post_ra>
// kernel: tpu_custom_call.1
= control target key start
LH: loop header
LB: loop body
LE: loop exit
PB: predicated region body
PF: predicated region fallthrough
CT: control target
= control target key end

     0   :  { %s848_s0 = inlined_call_operand.hbm [shape: s32[16], index: 0, kind: input, shape index: {}]   ;;  %s849_s1 = inlined_call_operand.hbm [shape: f32[64,128], index: 1, kind: input, shape index: {}]   ;;  %s850_s2 = inlined_call_operand.hbm [shape: f32[16,128], index: 2, kind: output, shape index: {}]  }
   0x1   :  { %s374_s11 = scalar_lea.hbm %s848_s0, 16 }
   0x2   :  { %p375_p0 = scmp.ne.s32.totalorder %s848_s0, %s374_s11  ;;  %p378_p1 = scmp.lt.u32.totalorder %s374_s11, %s848_s0 }
   0x4   :  { %p380_p2 = pnand %p378_p1, %p375_p0 }
   0x6   :  { %383 = shalt.err (!%p380_p2)  }
   0x7   :  { %s620_s16 = smov [#allocation4]  }
   0x8   :  { %8 = dma.hbm_to_smem %s848_s0, 16, %s620_s16, [#allocation3] }
   0x9   :  { %606 = dma.done.wait [#allocation3], 16 }
   0xa   :  { %607 = vsyncadd [#allocation3], 4294967280 }
   0xb   :  { %10 = sfence }
   0xc   :  { %11 = vsyncpa [#allocation6], 0  ;;  %s651_s19 = smov 0  }
   0xd LB: > { %s657_s20 = sshll.u32 %s614_s19, 3  ;;  %s688_s11 = scalar_lea.hbm %s849_s1, 1024  ;;  %s614_s19 = sphi %s651_s19, %s18_s19  }
   0xe   : > { %s21_s0 = sld [smem:[#allocation4 + %s657_s20]]  ;;  %s40_s21 = sadd.s32 1, %s657_s20 }
   0xf   : > { %s662_s22 = scalar_lea.vmem [#allocation5], %s657_s20  ;;  %s665_s24 = sld [smem:[#allocation4 + %s40_s21]] }
  0x10   : > { %s36_s23 = sshll.u32 %s662_s22, 4  ;;  %s240_s25 = scalar_lea.vmem %s662_s22, 1 [#allocation5]  ;;  %s671_s23 = int_to_ptr.vmem [resolvable:$true] %s36_s23 }
  0x11   : > { %s61_s26 = sadd.s32 2, %s657_s20  ;;  %s57_s27 = sshll.u32 %s240_s25, 4  ;;  %s673_s27 = int_to_ptr.vmem [resolvable:$true] %s57_s27 }
  0x12   : > { %s669_s28 = sld [smem:[#allocation4 + %s61_s26]]  ;;  %s245_s29 = scalar_lea.vmem %s662_s22, 2 [#allocation5] }
  0x13   : > { %s82_s30 = sadd.s32 3, %s657_s20 }
  0x14   : > { %p22_p3 = scmp.gt.s32.totalorder %s21_s0, 0  ;;  %p282_p4 = scmp.lt.s32.totalorder %s21_s0, 63 }
  0x15   : > { %p43_p5 = scmp.gt.s32.totalorder %s665_s24, 0  ;;  %p288_p6 = scmp.lt.s32.totalorder %s665_s24, 63 }
  0x16   : > { %s852_s0 = smov (!%p22_p3, %s21_s0), 0 }
  0x17   : > { %s854_s0 = smov (!%p282_p4, %s852_s0), 63 }
  0x18   : > { %s44_s3 = scalar_select %p43_p5, %s665_s24, 0 }
  0x19   : > { %s287_s4 = sshll.u32 %s854_s0, 4  ;;  %p64_p7 = scmp.gt.s32.totalorder %s669_s28, 0 }
  0x1a   : > { %s27_s7 = scalar_lea.hbm %s849_s1, %s287_s4  ;;  %p295_p8 = scmp.lt.s32.totalorder %s669_s28, 63 }
  0x1b   : > { %s384_s8 = scalar_lea.hbm %s27_s7, 16  ;;  %p387_p10 = scmp.lt.u32.totalorder %s27_s7, %s849_s1 }
  0x1c   : > { %p385_p9 = scmp.ne.s32.totalorder %s27_s7, %s384_s8  ;;  %p388_p11 = scmp.lt.u32.totalorder %s688_s11, %s384_s8 }
  0x1d   : > { %p390_p13 = scmp.lt.u32.totalorder %s384_s8, %s27_s7 }
  0x1e   : > { %p389_p12 = por %p388_p11, %p387_p10 }
  0x20   : > { %p391_p0 = por %p390_p13, %p389_p12 }
  0x22   : > { %p392_p1 = pnand %p391_p0, %p385_p9 }
  0x24   : > { %395 = shalt.err (!%p392_p1)  }
  0x25   : > { %s396_s14 = scalar_lea.vmem %s671_s23, 16  ;;  %s621_s15 = smov [#allocation5]  }
  0x26   : > { %p397_p2 = scmp.ne.s32.totalorder %s671_s23, %s396_s14  ;;  %s398_s16 = sshll.u32 %s621_s15, 4  ;;  %s696_s16 = int_to_ptr.vmem [resolvable:$false] %s398_s16 }
  0x27   : > { %s699_s17 = scalar_lea.vmem %s696_s16, 256  ;;  %p401_p3 = scmp.lt.s32.totalorder %s671_s23, %s696_s16 }
  0x28   : > { %p402_p4 = scmp.lt.s32.totalorder %s699_s17, %s396_s14 }
  0x2a   : > { %p403_p5 = por %p402_p4, %p401_p3 }
  0x2c   : > { %p404_p10 = pnand %p403_p5, %p397_p2 }
  0x2e   : > { %407 = shalt.err (!%p404_p10)  }
  0x2f   : > { %39 = dma.hbm_to_vmem [thread:$0]  %s27_s7, 16, %s671_s23, [#allocation2] }
  0x30   : > { %s856_s3 = smov (!%p288_p6, %s44_s3), 63  ;;  %s78_s21 = sshll.u32 %s245_s29, 4  ;;  %s79_s21 = int_to_ptr.vmem [resolvable:$true] %s78_s21 }
  0x31   : > { %s65_s18 = scalar_select %p64_p7, %s669_s28, 0 }
  0x32   : > { %s293_s0 = sshll.u32 %s856_s3, 4  ;;  %s717_s5 = sld [smem:[#allocation4 + %s82_s30]] }
  0x33   : > { %s48_s4 = scalar_lea.hbm %s849_s1, %s293_s0 }
  0x34   : > { %s408_s6 = scalar_lea.hbm %s48_s4, 16  ;;  %p411_p11 = scmp.lt.u32.totalorder %s48_s4, %s849_s1 }
  0x35   : > { %p409_p9 = scmp.ne.s32.totalorder %s48_s4, %s408_s6  ;;  %p412_p12 = scmp.lt.u32.totalorder %s688_s11, %s408_s6 }
  0x36   : > { %p414_p13 = scmp.lt.u32.totalorder %s408_s6, %s48_s4 }
  0x37   : > { %p413_p6 = por %p412_p12, %p411_p11 }
  0x39   : > { %p415_p7 = por %p414_p13, %p413_p6 }
  0x3b   : > { %p416_p0 = pnand %p415_p7, %p409_p9 }
  0x3d   : > { %419 = shalt.err (!%p416_p0)  }
  0x3e   : > { %s420_s23 = scalar_lea.vmem %s673_s27, 16  ;;  %p425_p2 = scmp.lt.s32.totalorder %s673_s27, %s696_s16 }
  0x3f   : > { %p421_p1 = scmp.ne.s32.totalorder %s673_s27, %s420_s23  ;;  %p426_p3 = scmp.lt.s32.totalorder %s699_s17, %s420_s23 }
  0x41   : > { %p427_p4 = por %p426_p3, %p425_p2 }
  0x43   : > { %p428_p5 = pnand %p427_p4, %p421_p1 }
  0x45   : > { %431 = shalt.err (!%p428_p5)  }
  0x46   : > { %60 = dma.hbm_to_vmem [thread:$0]  %s48_s4, 16, %s673_s27, [#allocation2] }
  0x47   : > { %s858_s18 = smov (!%p295_p8, %s65_s18), 63  ;;  %s250_s24 = scalar_lea.vmem %s662_s22, 3 [#allocation5] }
  0x48   : > { %s300_s29 = sshll.u32 %s858_s18, 4  ;;  %s103_s30 = sadd.s32 4, %s657_s20 }
  0x49   : > { %s69_s10 = scalar_lea.hbm %s849_s1, %s300_s29  ;;  %s99_s12 = sshll.u32 %s250_s24, 4  ;;  %s100_s12 = int_to_ptr.vmem [resolvable:$true] %s99_s12 }
  0x4a   : > { %s432_s13 = scalar_lea.hbm %s69_s10, 16  ;;  %p435_p9 = scmp.lt.u32.totalorder %s69_s10, %s849_s1 }
  0x4b   : > { %p433_p10 = scmp.ne.s32.totalorder %s69_s10, %s432_s13  ;;  %p436_p11 = scmp.lt.u32.totalorder %s688_s11, %s432_s13 }
  0x4c   : > { %p438_p6 = scmp.lt.u32.totalorder %s432_s13, %s69_s10 }
  0x4d   : > { %p437_p12 = por %p436_p11, %p435_p9 }
  0x4f   : > { %p439_p13 = por %p438_p6, %p437_p12 }
  0x51   : > { %p440_p8 = pnand %p439_p13, %p433_p10 }
  0x53   : > { %443 = shalt.err (!%p440_p8)  }
  0x54   : > { %s444_s27 = scalar_lea.vmem %s79_s21, 16  ;;  %p449_p0 = scmp.lt.s32.totalorder %s79_s21, %s696_s16 }
  0x55   : > { %p445_p7 = scmp.ne.s32.totalorder %s79_s21, %s444_s27  ;;  %p450_p1 = scmp.lt.s32.totalorder %s699_s17, %s444_s27 }
  0x57   : > { %p451_p2 = por %p450_p1, %p449_p0 }
  0x59   : > { %p452_p3 = pnand %p451_p2, %p445_p7 }
  0x5b   : > { %455 = shalt.err (!%p452_p3)  }
  0x5c   : > { %81 = dma.hbm_to_vmem [thread:$0]  %s69_s10, 16, %s79_s21, [#allocation2] }
  0x5d   : > { %p85_p4 = scmp.gt.s32.totalorder %s717_s5, 0  ;;  %p302_p5 = scmp.lt.s32.totalorder %s717_s5, 63 }
  0x5e   : > { %s744_s28 = sld [smem:[#allocation4 + %s103_s30]]  ;;  %s255_s18 = scalar_lea.vmem %s662_s22, 4 [#allocation5] }
  0x5f   : > { %s860_s5 = smov (!%p85_p4, %s717_s5), 0  ;;  %s120_s0 = sshll.u32 %s255_s18, 4  ;;  %s751_s0 = int_to_ptr.vmem [resolvable:$true] %s120_s0 }
  0x60   : > { %s124_s25 = sadd.s32 5, %s657_s20  ;;  %s862_s5 = smov (!%p302_p5, %s860_s5), 63 }
  0x61   : > { %s749_s26 = sld [smem:[#allocation4 + %s124_s25]]  ;;  %s307_s21 = sshll.u32 %s862_s5, 4 }
  0x62   : > { %s90_s8 = scalar_lea.hbm %s849_s1, %s307_s21 }
  0x63   : > { %s456_s9 = scalar_lea.hbm %s90_s8, 16  ;;  %p459_p11 = scmp.lt.u32.totalorder %s90_s8, %s849_s1 }
  0x64   : > { %p106_p10 = scmp.gt.s32.totalorder %s744_s28, 0  ;;  %p457_p9 = scmp.ne.s32.totalorder %s90_s8, %s456_s9 }
  0x65   : > { %p460_p12 = scmp.lt.u32.totalorder %s688_s11, %s456_s9  ;;  %p462_p13 = scmp.lt.u32.totalorder %s456_s9, %s90_s8 }
  0x67   : > { %p461_p6 = por %p460_p12, %p459_p11 }
  0x69   : > { %p463_p8 = por %p462_p13, %p461_p6 }
  0x6b   : > { %p464_p7 = pnand %p463_p8, %p457_p9 }
  0x6d   : > { %467 = shalt.err (!%p464_p7)  }
  0x6e   : > { %s468_s5 = scalar_lea.vmem %s100_s12, 16  ;;  %p473_p1 = scmp.lt.s32.totalorder %s100_s12, %s696_s16 }
  0x6f   : > { %p469_p0 = scmp.ne.s32.totalorder %s100_s12, %s468_s5  ;;  %p474_p2 = scmp.lt.s32.totalorder %s699_s17, %s468_s5 }
  0x71   : > { %p475_p3 = por %p474_p2, %p473_p1 }
  0x73   : > { %p476_p4 = pnand %p475_p3, %p469_p0 }
  0x75   : > { %479 = shalt.err (!%p476_p4)  }
  0x76   : > { %102 = dma.hbm_to_vmem [thread:$0]  %s90_s8, 16, %s100_s12, [#allocation2] }
  0x77   : > { %s107_s29 = scalar_select %p106_p10, %s744_s28, 0 }
  0x78   : > { %p309_p5 = scmp.lt.s32.totalorder %s744_s28, 63  ;;  %s260_s30 = scalar_lea.vmem %s662_s22, 5 [#allocation5] }
  0x79   : > { %p127_p9 = scmp.gt.s32.totalorder %s749_s26, 0  ;;  %p316_p11 = scmp.lt.s32.totalorder %s749_s26, 63 }
  0x7a   : > { %s864_s29 = smov (!%p309_p5, %s107_s29), 63  ;;  %s141_s10 = sshll.u32 %s260_s30, 4  ;;  %s142_s10 = int_to_ptr.vmem [resolvable:$true] %s141_s10 }
  0x7b   : > { %s128_s3 = scalar_select %p127_p9, %s749_s26, 0 }
  0x7c   : > { %s314_s7 = sshll.u32 %s864_s29, 4  ;;  %s145_s15 = sadd.s32 6, %s657_s20 }
  0x7d   : > { %s111_s14 = scalar_lea.hbm %s849_s1, %s314_s7 }
  0x7e   : > { %s480_s27 = scalar_lea.hbm %s111_s14, 16  ;;  %p483_p6 = scmp.lt.u32.totalorder %s111_s14, %s849_s1 }
  0x7f   : > { %p481_p12 = scmp.ne.s32.totalorder %s111_s14, %s480_s27  ;;  %p484_p10 = scmp.lt.u32.totalorder %s688_s11, %s480_s27 }
  0x80   : > { %p486_p8 = scmp.lt.u32.totalorder %s480_s27, %s111_s14 }
  0x81   : > { %p485_p13 = por %p484_p10, %p483_p6 }
  0x83   : > { %p487_p7 = por %p486_p8, %p485_p13 }
  0x85   : > { %p488_p0 = pnand %p487_p7, %p481_p12 }
  0x87   : > { %491 = shalt.err (!%p488_p0)  }
  0x88   : > { %s492_s28 = scalar_lea.vmem %s751_s0, 16  ;;  %p497_p2 = scmp.lt.s32.totalorder %s751_s0, %s696_s16 }
  0x89   : > { %p493_p1 = scmp.ne.s32.totalorder %s751_s0, %s492_s28  ;;  %p498_p3 = scmp.lt.s32.totalorder %s699_s17, %s492_s28 }
  0x8b   : > { %p499_p4 = por %p498_p3, %p497_p2 }
  0x8d   : > { %p500_p5 = pnand %p499_p4, %p493_p1 }
  0x8f   : > { %503 = shalt.err (!%p500_p5)  }
  0x90   : > { %123 = dma.hbm_to_vmem [thread:$0]  %s111_s14, 16, %s751_s0, [#allocation2] }
  0x91   : > { %s866_s3 = smov (!%p316_p11, %s128_s3), 63  ;;  %s147_s21 = sld [smem:[#allocation4 + %s145_s15]] }
  0x92   : > { %s321_s4 = sshll.u32 %s866_s3, 4 }
  0x93   : > { %s132_s9 = scalar_lea.hbm %s849_s1, %s321_s4 }
  0x94   : > { %s504_s23 = scalar_lea.hbm %s132_s9, 16  ;;  %p507_p12 = scmp.lt.u32.totalorder %s132_s9, %s849_s1 }
  0x95   : > { %p505_p9 = scmp.ne.s32.totalorder %s132_s9, %s504_s23  ;;  %p508_p6 = scmp.lt.u32.totalorder %s688_s11, %s504_s23 }
  0x96   : > { %p510_p13 = scmp.lt.u32.totalorder %s504_s23, %s132_s9 }
  0x97   : > { %p509_p10 = por %p508_p6, %p507_p12 }
  0x99   : > { %p511_p8 = por %p510_p13, %p509_p10 }
  0x9b   : > { %p512_p7 = pnand %p511_p8, %p505_p9 }
  0x9d   : > { %515 = shalt.err (!%p512_p7)  }
  0x9e   : > { %s516_s0 = scalar_lea.vmem %s142_s10, 16  ;;  %p521_p0 = scmp.lt.s32.totalorder %s142_s10, %s696_s16 }
  0x9f   : > { %p517_p11 = scmp.ne.s32.totalorder %s142_s10, %s516_s0  ;;  %p522_p1 = scmp.lt.s32.totalorder %s699_s17, %s516_s0 }
  0xa1   : > { %p523_p2 = por %p522_p1, %p521_p0 }
  0xa3   : > { %p524_p3 = pnand %p523_p2, %p517_p11 }
  0xa5   : > { %527 = shalt.err (!%p524_p3)  }
  0xa6   : > { %144 = dma.hbm_to_vmem [thread:$0]  %s132_s9, 16, %s142_s10, [#allocation2] }
  0xa7   : > { %s265_s26 = scalar_lea.vmem %s662_s22, 6 [#allocation5]  ;;  %s166_s29 = sadd.s32 7, %s657_s20 }
  0xa8   : > { %s798_s30 = sld [smem:[#allocation4 + %s166_s29]]  ;;  %p148_p4 = scmp.gt.s32.totalorder %s147_s21, 0 }
  0xa9   : > { %p323_p5 = scmp.lt.s32.totalorder %s147_s21, 63  ;;  %s162_s3 = sshll.u32 %s265_s26, 4  ;;  %s163_s3 = int_to_ptr.vmem [resolvable:$true] %s162_s3 }
  0xaa   : > { %s868_s21 = smov (!%p148_p4, %s147_s21), 0  ;;  %s270_s7 = scalar_lea.vmem %s662_s22, 7 [#allocation5] }
  0xab   : > { %s870_s21 = smov (!%p323_p5, %s868_s21), 63  ;;  %s183_s10 = sshll.u32 %s270_s7, 4  ;;  %s184_s10 = int_to_ptr.vmem [resolvable:$true] %s183_s10 }
  0xac   : > { %s328_s12 = sshll.u32 %s870_s21, 4 }
  0xad   : > { %s153_s15 = scalar_lea.hbm %s849_s1, %s328_s12 }
  0xae   : > { %p169_p9 = scmp.gt.s32.totalorder %s798_s30, 0  ;;  %p330_p12 = scmp.lt.s32.totalorder %s798_s30, 63 }
  0xaf   : > { %s528_s20 = scalar_lea.hbm %s153_s15, 16  ;;  %p531_p10 = scmp.lt.u32.totalorder %s153_s15, %s849_s1 }
  0xb0   : > { %p529_p6 = scmp.ne.s32.totalorder %s153_s15, %s528_s20  ;;  %p532_p13 = scmp.lt.u32.totalorder %s688_s11, %s528_s20 }
  0xb1   : > { %p534_p7 = scmp.lt.u32.totalorder %s528_s20, %s153_s15 }
  0xb2   : > { %p533_p8 = por %p532_p13, %p531_p10 }
  0xb4   : > { %p535_p11 = por %p534_p7, %p533_p8 }
  0xb6   : > { %p536_p0 = pnand %p535_p11, %p529_p6 }
  0xb8   : > { %539 = shalt.err (!%p536_p0)  }
  0xb9   : > { %s540_s22 = scalar_lea.vmem %s163_s3, 16  ;;  %p545_p2 = scmp.lt.s32.totalorder %s163_s3, %s696_s16 }
  0xba   : > { %p541_p1 = scmp.ne.s32.totalorder %s163_s3, %s540_s22  ;;  %p546_p3 = scmp.lt.s32.totalorder %s699_s17, %s540_s22 }
  0xbc   : > { %p547_p4 = por %p546_p3, %p545_p2 }
  0xbe   : > { %p548_p5 = pnand %p547_p4, %p541_p1 }
  0xc0   : > { %551 = shalt.err (!%p548_p5)  }
  0xc1   : > { %165 = dma.hbm_to_vmem [thread:$0]  %s153_s15, 16, %s163_s3, [#allocation2] }
  0xc2   : > { %s170_s25 = scalar_select %p169_p9, %s798_s30, 0 }
  0xc4   : > { %s872_s25 = smov (!%p330_p12, %s170_s25), 63 }
  0xc5   : > { %s335_s28 = sshll.u32 %s872_s25, 4 }
  0xc6   : > { %s174_s6 = scalar_lea.hbm %s849_s1, %s335_s28 }
  0xc7   : > { %s552_s8 = scalar_lea.hbm %s174_s6, 16  ;;  %p555_p10 = scmp.lt.u32.totalorder %s174_s6, %s849_s1 }
  0xc8   : > { %p553_p6 = scmp.ne.s32.totalorder %s174_s6, %s552_s8  ;;  %p556_p13 = scmp.lt.u32.totalorder %s688_s11, %s552_s8 }
  0xc9   : > { %p558_p7 = scmp.lt.u32.totalorder %s552_s8, %s174_s6 }
  0xca   : > { %p557_p8 = por %p556_p13, %p555_p10 }
  0xcc   : > { %p559_p11 = por %p558_p7, %p557_p8 }
  0xce   : > { %p560_p0 = pnand %p559_p11, %p553_p6 }
  0xd0   : > { %563 = shalt.err (!%p560_p0)  }
  0xd1   : > { %s564_s24 = scalar_lea.vmem %s184_s10, 16  ;;  %p569_p12 = scmp.lt.s32.totalorder %s184_s10, %s696_s16 }
  0xd2   : > { %p565_p9 = scmp.ne.s32.totalorder %s184_s10, %s564_s24  ;;  %p570_p1 = scmp.lt.s32.totalorder %s699_s17, %s564_s24 }
  0xd4   : > { %p571_p2 = por %p570_p1, %p569_p12 }
  0xd6   : > { %p572_p3 = pnand %p571_p2, %p565_p9 }
  0xd8   : > { %575 = shalt.err (!%p572_p3)  }
  0xd9   : > { %186 = dma.hbm_to_vmem [thread:$0]  %s174_s6, 16, %s184_s10, [#allocation2] }
  0xda   : > { %s18_s19 = sadd.s32 1, %s614_s19  }
  0xdb   : > { %p15_p4 = scmp.ge.s32.totalorder %s18_s19, 2  }
  0xdc   :  { %s616_s11 = smov (%p15_p4), 0  }
  0xdd   :  { %17 = sbr.rel (!%p15_p4) target bundleno = 13 (0xd), region = 82 }
  0xe4 LB: > { %608 = dma.done.wait [#allocation2], 128  ;;  %s618_s11 = sphi %s616_s11, %s192_s11  }
  0xe5   : > { %609 = vsyncadd [#allocation2], 4294967168  ;;  %s192_s11 = sadd.s32 1, %s618_s11  }
  0xe6   : > { %p189_p5 = scmp.ge.s32.totalorder %s192_s11, 2  }
  0xe7   :  { %p577_p6 = scmp.ne.s32.totalorder (%p189_p5), %s696_s16, %s699_s17  ;;  %p581_p10 = scmp.lt.s32.totalorder (%p189_p5), %s696_s16, %s696_s16 }
  0xe8   :  { %191 = sbr.rel (!%p189_p5) target bundleno = 228 (0xe4), region = 93  ;;  %p582_p13 = scmp.lt.s32.totalorder (%p189_p5), %s699_s17, %s699_s17 }
  0xea   :  { %p583_p8 = por (%p189_p5), %p582_p13, %p581_p10 }
  0xec   :  { %p584_p7 = pnand (%p189_p5), %p583_p8, %p577_p6 }
  0xef   :  { %587 = shalt.err (!%p584_p7)
}
  0xf0   :  { %s588_s5 = scalar_lea.hbm %s850_s2, 256 }
  0xf1   :  { %p589_p11 = scmp.ne.s32.totalorder %s850_s2, %s588_s5  ;;  %p592_p0 = scmp.lt.u32.totalorder %s588_s5, %s850_s2 }
  0xf3   :  { %p594_p9 = pnand %p592_p0, %p589_p11 }
  0xf5   :  { %597 = shalt.err (!%p594_p9)
}
  0xf6   :  { %s622_s3 = smov 128   ;;  %s623_s17 = smov 8  }
  0xf7   :  { %221 = dma.vmem_to_hbm [thread:$0]  %s696_s16, 256, %s850_s2, [#allocation6], %s622_s3, %s622_s3, %s623_s17  }
  0xf8   :  { %610 = dma.done.wait [#allocation6], 256  }
  0xf9   :  { %611 = vsyncadd [#allocation6], 4294967040 }
  0xfa   :  { %225 = vsyncpa [#allocation6], 1 }
  0xfb   :  { %226 = vsyncmov [#allocation2] }
  0xfe   :  { %s227_s10 = vpop.sfrf %226 }
  0xff   :  { %p337_p12 = scmp.ne.s32.totalorder %s227_s10, 0 }
 0x101   :  { %231 = shalt.err (%p337_p12)  }

</bundles_post_ra>
